<compile_context>
chip_gen: v5e
topology: v5e:2x2
jax: 0.10.0
libtpu: 0.0.40
codegen_flags: <defaults>
</compile_context>

<pallas_src>
import functools

import jax
import jax.numpy as jnp
from jax import lax
from jax.experimental import pallas as pl
from jax.experimental.pallas import tpu as pltpu


def _round_up(x, m):
    return (x + m - 1) // m * m


def _tpu_generation():
    """Best-effort TPU generation tag: 'v5e', 'v6e', 'v7x' or 'other'."""
    try:
        kind = jax.devices()[0].device_kind.lower()
    except Exception:
        return "other"
    if "v5 lite" in kind or "v5e" in kind or "v5litepod" in kind:
        return "v5e"
    if "7x" in kind or "v7" in kind:
        return "v7x"
    if "v6" in kind:
        return "v6e"
    return "other"


def _vmem_capacity_bytes():
    """Physical VMEM bytes per core, via get_tpu_info with a conservative fallback."""
    try:
        info = pltpu.get_tpu_info()
        cap = getattr(info, "vmem_capacity_bytes", None)
        if cap:
            return int(cap)
    except Exception:
        pass
    return (64 << 20) if _tpu_generation() == "v7x" else (128 << 20)


def _mnrl_kernel(a_ref, c_ref, t_ref, loss_ref, m_sc, l_sc, *,
                 mask_last, c_valid_last):
    """One (anchor-tile i, candidate-tile j) step of the online-logsumexp CE loss.

    a_ref : [TB, D] bf16, L2-normalized anchors with `scale` already folded in.
    c_ref : [TC, D] bf16, L2-normalized candidates.
    t_ref : [TB, 1] f32, target logit (scale * cos(anchor_i, positive_i)) computed
            from the same bf16 operands outside the kernel.
    """
    j = pl.program_id(1)           # candidate-tile index (inner, "arbitrary")
    n_c = pl.num_programs(1)

    @pl.when(j == 0)
    def _init():
        m_sc[...] = jnp.full_like(m_sc, -jnp.inf)
        l_sc[...] = jnp.zeros_like(l_sc)

    # MXU: bf16 operands, f32 accumulation, 'nt' contraction (no candidate transpose).
    scores = lax.dot_general(
        a_ref[...], c_ref[...],
        dimension_numbers=(((1,), (1,)), ((), ())),
        preferred_element_type=jnp.float32)                              # [TB, TC]

    def _update(s):
        # Online logsumexp carried in VMEM scratch across the C axis.
        m_prev = m_sc[...]
        m_new = jnp.maximum(m_prev, jnp.max(s, axis=-1, keepdims=True))
        alpha = jnp.exp(m_prev - m_new)
        l_sc[...] = alpha * l_sc[...] + jnp.sum(jnp.exp(s - m_new),
                                                axis=-1, keepdims=True)
        m_sc[...] = m_new

    if mask_last:
        # Only the last candidate tile can be partial -> pay the masking pass only there.
        @pl.when(j != n_c - 1)
        def _full_tile():
            _update(scores)

        @pl.when(j == n_c - 1)
        def _partial_tile():
            col = lax.broadcasted_iota(jnp.int32, scores.shape, 1)
            _update(jnp.where(col < c_valid_last, scores, -1e30))
    else:
        _update(scores)

    @pl.when(j == n_c - 1)
    def _finalize():
        # per-row cross-entropy: logsumexp(scores_row) - target_row.
        # (last-dim-1 store only happens once per anchor tile -> off critical path)
        loss_ref[...] = m_sc[...] + jnp.log(l_sc[...]) - t_ref[...]


def multiple_negatives_ranking_loss(anchors, candidates, scale=20.0, *,
                                    mxu_dtype=jnp.bfloat16,
                                    b_tile=None, c_tile=None):
    """anchors: [B, D]; candidates: [C, D], candidates[:B] are the positives. Scalar loss."""
    B, D = anchors.shape
    C, Dc = candidates.shape
    assert Dc == D
    assert C >= B, "candidates[:B] must be the positives in anchor order (labels = arange(B))"

    gen = _tpu_generation()

    # --- per-generation tile defaults ---------------------------------------------
    if b_tile is None:
        bt_default = 128 if gen == "v5e" else 512   # v5e: smaller score tile / vst pressure
        b_tile = bt_default if B >= bt_default else _round_up(B, 16)  # bf16 sublane packing
    if c_tile is None:
        lane_mult = 128 if gen == "v5e" else 256    # match 4x128 vs 2x256 MXU width
        c_tile = 512 if C >= 512 else _round_up(C, lane_mult)

    # --- VMEM budget: shrink tiles if the bf16 footprint would overflow (v7x 64 MiB) ---
    e = jnp.dtype(mxu_dtype).itemsize
    vmem_cap = _vmem_capacity_bytes()
    budget = int(vmem_cap * 0.5)

    def footprint(bt, ct, nbuf):
        return (2 * bt * D * e          # anchors (double-buffered)
                + nbuf * ct * D * e     # candidate stream
                + 2 * bt * ct * 4       # f32 score tile + exp temporary
                + 2 * bt * 128 * 4      # target input buffers (lane-padded)
                + 2 * bt * 128 * 4      # output buffers (lane-padded)
                + 2 * bt * 128 * 4)     # m/l scratch (lane-padded)

    while footprint(b_tile, c_tile, 3) > budget and (b_tile > 128 or c_tile > 256):
        if c_tile > 256:
            c_tile //= 2
        else:
            b_tile //= 2

    B_pad = _round_up(B, b_tile)
    C_pad = _round_up(C, c_tile)
    nb = B_pad // b_tile
    nc = C_pad // c_tile
    cand_bufs = 3 if nc >= 3 else 2

    # --- one memory-bound XLA pass outside the kernel ------------------------------
    # L2-normalize in f32, fold `scale` into the anchors, cast to the MXU dtype, and
    # compute the target logit from the SAME quantized operands the MXU will see.
    a32 = anchors.astype(jnp.float32)
    c32 = candidates.astype(jnp.float32)
    a_n = a32 * lax.rsqrt(jnp.maximum(jnp.sum(a32 * a32, -1, keepdims=True), 1e-24))
    c_n = c32 * lax.rsqrt(jnp.maximum(jnp.sum(c32 * c32, -1, keepdims=True), 1e-24))
    a_q = (a_n * float(scale)).astype(mxu_dtype)     # scale folded -> no per-step score mul
    c_q = c_n.astype(mxu_dtype)
    target = jnp.sum(a_q.astype(jnp.float32) * c_q[:B].astype(jnp.float32),
                     axis=-1, keepdims=True)                                  # [B, 1] f32

    a_p = jnp.zeros((B_pad, D), mxu_dtype).at[:B].set(a_q)
    c_p = jnp.zeros((C_pad, D), mxu_dtype).at[:C].set(c_q)
    t_p = jnp.zeros((B_pad, 1), jnp.float32).at[:B].set(target)

    mask_last = (C % c_tile) != 0
    c_valid_last = C - (nc - 1) * c_tile

    kernel = functools.partial(_mnrl_kernel, mask_last=mask_last,
                               c_valid_last=c_valid_last)

    # Candidate stream: deeper prefetch when the C axis is long (HBM-bound regime).
    cand_map = lambda i, j: (j, 0)
    cand_spec = pl.BlockSpec((c_tile, D), cand_map)
    if cand_bufs > 2:
        try:
            cand_spec = pl.BlockSpec((c_tile, D), cand_map,
                                     pipeline_mode=pl.Buffered(cand_bufs))
        except TypeError:  # older BlockSpec without pipeline_mode -> default 2 buffers
            cand_spec = pl.BlockSpec((c_tile, D), cand_map)

    vmem_limit = int(min(max(footprint(b_tile, c_tile, cand_bufs) + (4 << 20), 8 << 20),
                         int(vmem_cap * 0.75)))

    per_row = pl.pallas_call(
        kernel,
        out_shape=jax.ShapeDtypeStruct((B_pad, 1), jnp.float32),
        grid_spec=pltpu.PrefetchScalarGridSpec(
            num_scalar_prefetch=0,
            grid=(nb, nc),
            in_specs=[
                pl.BlockSpec((b_tile, D), lambda i, j: (i, 0)),   # anchors (bf16, scaled)
                cand_spec,                                        # candidate tiles (bf16)
                pl.BlockSpec((b_tile, 1), lambda i, j: (i, 0)),   # target logits (f32)
            ],
            out_specs=pl.BlockSpec((b_tile, 1), lambda i, j: (i, 0)),
            scratch_shapes=[pltpu.VMEM((b_tile, 1), jnp.float32)] * 2,   # m, l
        ),
        compiler_params=pltpu.CompilerParams(
            dimension_semantics=("parallel", "arbitrary"),
            vmem_limit_bytes=vmem_limit),
    )(a_p, c_p, t_p)

    # Tiny final reduce outside the kernel; padded anchor rows are dropped.
    return jnp.mean(per_row[:B, 0])


def _matched_reference(anchors, candidates, scale=20.0, mxu_dtype=jnp.bfloat16):
    """Reference with the exact same quantization pipeline as the kernel."""
    B = anchors.shape[0]
    a = anchors.astype(jnp.float32)
    c = candidates.astype(jnp.float32)
    a_n = a * lax.rsqrt(jnp.maximum(jnp.sum(a * a, -1, keepdims=True), 1e-24))
    c_n = c * lax.rsqrt(jnp.maximum(jnp.sum(c * c, -1, keepdims=True), 1e-24))
    a_q = (a_n * float(scale)).astype(mxu_dtype)
    c_q = c_n.astype(mxu_dtype)
    scores = jnp.dot(a_q, c_q.T, preferred_element_type=jnp.float32)
    target = jnp.sum(a_q.astype(jnp.float32) * c_q[:B].astype(jnp.float32), axis=-1)
    lse = jax.nn.logsumexp(scores, axis=-1)
    return jnp.mean(lse - target)


def _reference_loss_f32(anchors, candidates, scale=20.0):
    """Pure-f32 (torch-equivalent) reference: cos_sim * scale + CE(labels=arange(B))."""
    B = anchors.shape[0]
    a = anchors.astype(jnp.float32)
    c = candidates.astype(jnp.float32)
    a_n = a * lax.rsqrt(jnp.maximum(jnp.sum(a * a, -1, keepdims=True), 1e-24))
    c_n = c * lax.rsqrt(jnp.maximum(jnp.sum(c * c, -1, keepdims=True), 1e-24))
    scores = jnp.dot(a_n, c_n.T, preferred_element_type=jnp.float32) * float(scale)
    target = float(scale) * jnp.sum(a_n * c_n[:B], axis=-1)
    lse = jax.nn.logsumexp(scores, axis=-1)
    return jnp.mean(lse - target)


if __name__ == "__main__":
    # Synthetic "sentence embeddings": (anchor, positive, negative) triplets.
    B, D = 8, 128
    scale = 20.0

    key = jax.random.PRNGKey(0)
    k_a, k_p, k_n = jax.random.split(key, 3)
    anchors = jax.random.normal(k_a, (B, D), dtype=jnp.float32)
    positives = anchors + 0.1 * jax.random.normal(k_p, (B, D), dtype=jnp.float32)
    negatives = jax.random.normal(k_n, (B, D), dtype=jnp.float32)

    # candidates = cat([positive, negative], dim=0)  -> [2B, D]
    candidates = jnp.concatenate([positives, negatives], axis=0)

    loss = multiple_negatives_ranking_loss(anchors, candidates, scale=scale)
    loss = jax.block_until_ready(loss)

    # Tight check vs a reference that uses the identical bf16 quantization pipeline.
    ref_matched = _matched_reference(anchors, candidates, scale)
    assert jnp.allclose(loss, ref_matched, atol=1e-3, rtol=1e-3), (loss, ref_matched)

    # Loose sanity check vs the pure-f32 (torch-equivalent) loss; bf16 rounding at
    # scale=20 bounds the absolute deviation well under 0.1.
    ref_f32 = _reference_loss_f32(anchors, candidates, scale)
    assert jnp.allclose(loss, ref_f32, atol=1e-1), (loss, ref_f32)

    print("KERNEL_OK")
</pallas_src>

<mosaic_0001>
module attributes {stable_mosaic.version = 11 : i64} {
  func.func @_mnrl_kernel(%arg0: i32, %arg1: i32, %arg2: memref<16x128xbf16, #tpu.memory_space<vmem>>, %arg3: memref<256x128xbf16, #tpu.memory_space<vmem>>, %arg4: memref<16x1xf32, #tpu.memory_space<vmem>>, %arg5: memref<16x1xf32, #tpu.memory_space<vmem>>, %arg6: memref<16x1xf32, #tpu.memory_space<vmem>>, %arg7: memref<16x1xf32, #tpu.memory_space<vmem>>) attributes {dimension_semantics = [#tpu.dimension_semantics<parallel>, #tpu.dimension_semantics<arbitrary>], iteration_bounds = array<i64: 1, 1>, scalar_prefetch = 0 : i64, scratch_operands = 2 : i64, tpu.core_type = #tpu.core_type<tc>, window_params = [{transform_indices = @transform_0, window_bounds = array<i64: 16, 128>}, {transform_indices = @transform_1, window_bounds = array<i64: 256, 128>}, {transform_indices = @transform_2, window_bounds = array<i64: 16, 1>}, {transform_indices = @transform_3, window_bounds = array<i64: 16, 1>}]} {
    %c0_i32 = arith.constant 0 : i32
    %0 = arith.cmpi eq, %arg1, %c0_i32 : i32
    %1 = arith.extui %0 : i1 to i32
    %c0_i32_0 = arith.constant 0 : i32
    %2 = arith.cmpi ne, %1, %c0_i32_0 : i32
    scf.if %2 {
      %cst_10 = arith.constant 0xFF800000 : f32
      %15 = vector.broadcast %cst_10 : f32 to vector<16x1xf32>
      %c0_11 = arith.constant 0 : index
      %c0_12 = arith.constant 0 : index
      %16 = vector.load %arg6[%c0_11, %c0_12] : memref<16x1xf32, #tpu.memory_space<vmem>>, vector<16x1xf32>
      tpu.vector_store %arg6[%c0_11, %c0_12], %15 {strides = array<i32>} : memref<16x1xf32, #tpu.memory_space<vmem>>, vector<16x1xf32>,
      %cst_13 = arith.constant 0.000000e+00 : f32
      %17 = vector.broadcast %cst_13 : f32 to vector<16x1xf32>
      %c0_14 = arith.constant 0 : index
      %c0_15 = arith.constant 0 : index
      %18 = vector.load %arg7[%c0_14, %c0_15] : memref<16x1xf32, #tpu.memory_space<vmem>>, vector<16x1xf32>
      tpu.vector_store %arg7[%c0_14, %c0_15], %17 {strides = array<i32>} : memref<16x1xf32, #tpu.memory_space<vmem>>, vector<16x1xf32>,
    } else {
    }
    %c0 = arith.constant 0 : index
    %c0_1 = arith.constant 0 : index
    %3 = vector.load %arg2[%c0, %c0_1] : memref<16x128xbf16, #tpu.memory_space<vmem>>, vector<16x128xbf16>
    %c0_2 = arith.constant 0 : index
    %c0_3 = arith.constant 0 : index
    %4 = vector.load %arg3[%c0_2, %c0_3] : memref<256x128xbf16, #tpu.memory_space<vmem>>, vector<256x128xbf16>
    %cst = arith.constant dense<0.000000e+00> : vector<16x256xf32>
    %5 = tpu.matmul %3, %4, %cst {dimension_numbers = #tpu.dot_dimension_numbers<[1], [1], [0], [0], [0, 0, 1, 0], [], []>} : vector<16x128xbf16>, vector<256x128xbf16>, vector<16x256xf32> -> vector<16x256xf32>
    %c0_i32_4 = arith.constant 0 : i32
    %6 = arith.cmpi ne, %arg1, %c0_i32_4 : i32
    %7 = arith.extui %6 : i1 to i32
    %c0_i32_5 = arith.constant 0 : i32
    %8 = arith.cmpi ne, %7, %c0_i32_5 : i32
    scf.if %8 {
      %c0_10 = arith.constant 0 : index
      %c0_11 = arith.constant 0 : index
      %15 = vector.load %arg6[%c0_10, %c0_11] : memref<16x1xf32, #tpu.memory_space<vmem>>, vector<16x1xf32>
      %cst_12 = arith.constant dense<0xFF800000> : vector<16xf32>
      %16 = vector.multi_reduction <maximumf>, %5, %cst_12 [1] : vector<16x256xf32> to vector<16xf32>
      %17 = vector.shape_cast %16 : vector<16xf32> to vector<16x1xf32>
      %18 = arith.maximumf %15, %17 : vector<16x1xf32>
      %19 = arith.subf %15, %18 : vector<16x1xf32>
      %20 = math.exp %19 : vector<16x1xf32>
      %c0_13 = arith.constant 0 : index
      %c0_14 = arith.constant 0 : index
      %21 = vector.load %arg7[%c0_13, %c0_14] : memref<16x1xf32, #tpu.memory_space<vmem>>, vector<16x1xf32>
      %22 = arith.mulf %20, %21 : vector<16x1xf32>
      %23 = vector.broadcast %18 : vector<16x1xf32> to vector<16x256xf32>
      %24 = arith.subf %5, %23 : vector<16x256xf32>
      %25 = math.exp %24 : vector<16x256xf32>
      %cst_15 = arith.constant dense<0.000000e+00> : vector<16xf32>
      %26 = vector.multi_reduction <add>, %25, %cst_15 [1] : vector<16x256xf32> to vector<16xf32>
      %27 = vector.shape_cast %26 : vector<16xf32> to vector<16x1xf32>
      %28 = arith.addf %22, %27 : vector<16x1xf32>
      %c0_16 = arith.constant 0 : index
      %c0_17 = arith.constant 0 : index
      %29 = vector.load %arg7[%c0_16, %c0_17] : memref<16x1xf32, #tpu.memory_space<vmem>>, vector<16x1xf32>
      tpu.vector_store %arg7[%c0_16, %c0_17], %28 {strides = array<i32>} : memref<16x1xf32, #tpu.memory_space<vmem>>, vector<16x1xf32>,
      %c0_18 = arith.constant 0 : index
      %c0_19 = arith.constant 0 : index
      %30 = vector.load %arg6[%c0_18, %c0_19] : memref<16x1xf32, #tpu.memory_space<vmem>>, vector<16x1xf32>
      tpu.vector_store %arg6[%c0_18, %c0_19], %18 {strides = array<i32>} : memref<16x1xf32, #tpu.memory_space<vmem>>, vector<16x1xf32>,
    } else {
    }
    %c0_i32_6 = arith.constant 0 : i32
    %9 = arith.cmpi eq, %arg1, %c0_i32_6 : i32
    %10 = arith.extui %9 : i1 to i32
    %c0_i32_7 = arith.constant 0 : i32
    %11 = arith.cmpi ne, %10, %c0_i32_7 : i32
    scf.if %11 {
      %15 = tpu.iota {dimensions = array<i32: 1>} : vector<16x256xi32>
      %c16_i32 = arith.constant 16 : i32
      %16 = vector.broadcast %c16_i32 : i32 to vector<16x256xi32>
      %17 = arith.cmpi slt, %15, %16 : vector<16x256xi32>
      %cst_10 = arith.constant -1.000000e+30 : f32
      %18 = vector.broadcast %cst_10 : f32 to vector<16x256xf32>
      %19 = arith.select %17, %5, %18 : vector<16x256xi1>, vector<16x256xf32>
      %c0_11 = arith.constant 0 : index
      %c0_12 = arith.constant 0 : index
      %20 = vector.load %arg6[%c0_11, %c0_12] : memref<16x1xf32, #tpu.memory_space<vmem>>, vector<16x1xf32>
      %cst_13 = arith.constant dense<0xFF800000> : vector<16xf32>
      %21 = vector.multi_reduction <maximumf>, %19, %cst_13 [1] : vector<16x256xf32> to vector<16xf32>
      %22 = vector.shape_cast %21 : vector<16xf32> to vector<16x1xf32>
      %23 = arith.maximumf %20, %22 : vector<16x1xf32>
      %24 = arith.subf %20, %23 : vector<16x1xf32>
      %25 = math.exp %24 : vector<16x1xf32>
      %c0_14 = arith.constant 0 : index
      %c0_15 = arith.constant 0 : index
      %26 = vector.load %arg7[%c0_14, %c0_15] : memref<16x1xf32, #tpu.memory_space<vmem>>, vector<16x1xf32>
      %27 = arith.mulf %25, %26 : vector<16x1xf32>
      %28 = vector.broadcast %23 : vector<16x1xf32> to vector<16x256xf32>
      %29 = arith.subf %19, %28 : vector<16x256xf32>
      %30 = math.exp %29 : vector<16x256xf32>
      %cst_16 = arith.constant dense<0.000000e+00> : vector<16xf32>
      %31 = vector.multi_reduction <add>, %30, %cst_16 [1] : vector<16x256xf32> to vector<16xf32>
      %32 = vector.shape_cast %31 : vector<16xf32> to vector<16x1xf32>
      %33 = arith.addf %27, %32 : vector<16x1xf32>
      %c0_17 = arith.constant 0 : index
      %c0_18 = arith.constant 0 : index
      %34 = vector.load %arg7[%c0_17, %c0_18] : memref<16x1xf32, #tpu.memory_space<vmem>>, vector<16x1xf32>
      tpu.vector_store %arg7[%c0_17, %c0_18], %33 {strides = array<i32>} : memref<16x1xf32, #tpu.memory_space<vmem>>, vector<16x1xf32>,
      %c0_19 = arith.constant 0 : index
      %c0_20 = arith.constant 0 : index
      %35 = vector.load %arg6[%c0_19, %c0_20] : memref<16x1xf32, #tpu.memory_space<vmem>>, vector<16x1xf32>
      tpu.vector_store %arg6[%c0_19, %c0_20], %23 {strides = array<i32>} : memref<16x1xf32, #tpu.memory_space<vmem>>, vector<16x1xf32>,
    } else {
    }
    %c0_i32_8 = arith.constant 0 : i32
    %12 = arith.cmpi eq, %arg1, %c0_i32_8 : i32
    %13 = arith.extui %12 : i1 to i32
    %c0_i32_9 = arith.constant 0 : i32
    %14 = arith.cmpi ne, %13, %c0_i32_9 : i32
    scf.if %14 {
      %c0_10 = arith.constant 0 : index
      %c0_11 = arith.constant 0 : index
      %15 = vector.load %arg6[%c0_10, %c0_11] : memref<16x1xf32, #tpu.memory_space<vmem>>, vector<16x1xf32>
      %c0_12 = arith.constant 0 : index
      %c0_13 = arith.constant 0 : index
      %16 = vector.load %arg7[%c0_12, %c0_13] : memref<16x1xf32, #tpu.memory_space<vmem>>, vector<16x1xf32>
      %17 = math.log %16 : vector<16x1xf32>
      %18 = arith.addf %15, %17 : vector<16x1xf32>
      %c0_14 = arith.constant 0 : index
      %c0_15 = arith.constant 0 : index
      %19 = vector.load %arg4[%c0_14, %c0_15] : memref<16x1xf32, #tpu.memory_space<vmem>>, vector<16x1xf32>
      %20 = arith.subf %18, %19 : vector<16x1xf32>
      %c0_16 = arith.constant 0 : index
      %c0_17 = arith.constant 0 : index
      %21 = vector.load %arg5[%c0_16, %c0_17] : memref<16x1xf32, #tpu.memory_space<vmem>>, vector<16x1xf32>
      tpu.vector_store %arg5[%c0_16, %c0_17], %20 {strides = array<i32>} : memref<16x1xf32, #tpu.memory_space<vmem>>, vector<16x1xf32>,
    } else {
    }
    return
  }
  func.func @transform_0(%arg0: i32, %arg1: i32) -> (i32, i32) {
    %c0_i32 = arith.constant 0 : i32
    %c0_i32_0 = arith.constant 0 : i32
    return %arg0, %c0_i32 : i32, i32
  }
  func.func @transform_1(%arg0: i32, %arg1: i32) -> (i32, i32) {
    %c0_i32 = arith.constant 0 : i32
    %c0_i32_0 = arith.constant 0 : i32
    return %arg1, %c0_i32 : i32, i32
  }
  func.func @transform_2(%arg0: i32, %arg1: i32) -> (i32, i32) {
    %c0_i32 = arith.constant 0 : i32
    %c0_i32_0 = arith.constant 0 : i32
    return %arg0, %c0_i32 : i32, i32
  }
  func.func @transform_3(%arg0: i32, %arg1: i32) -> (i32, i32) {
    %c0_i32 = arith.constant 0 : i32
    %c0_i32_0 = arith.constant 0 : i32
    return %arg0, %c0_i32 : i32, i32
  }
}

</mosaic_0001>

<bundles_post_ra>
// kernel: tpu_custom_call.1
= control target key start
LH: loop header
LB: loop body
LE: loop exit
PB: predicated region body
PF: predicated region fallthrough
CT: control target
= control target key end

     0   :  { %8 = vsyncpa [#allocation5], 0  ;;  %s485_s15 = smov [#allocation4]   ;;  %s486_s17 = smov 64   ;;  %s539_s0 = inlined_call_operand.vmem [shape: bf16[16,128], index: 0, kind: input, shape index: {}]   ;;  %s540_s1 = inlined_call_operand.hbm [shape: bf16[256,128], index: 1, kind: input, shape index: {}]   ;;  %s541_s2 = inlined_call_operand.vmem [shape: f32[16,1], index: 2, kind: input, shape index: {}]   ;;  %s542_s3 = inlined_call_operand.vmem [shape: f32[16,1], index: 3, kind: output, shape index: {}]  }
   0x1   :  { %s15_s14 = sshll.u32 %s540_s1, 4  ;;  %s17_s16 = sshll.u32 %s485_s15, 4  ;;  %s16_s14 = int_to_ptr.hbm [resolvable:$true] %s15_s14  ;;  %s18_s16 = int_to_ptr.vmem [resolvable:$true] %s17_s16 }
   0x2   :  { %s487_s18 = smov 4  }
   0x3   :  { %23 = dma.hbm_to_vmem [thread:$0]  %s16_s14, 2048, %s18_s16, [#allocation5], %s486_s17, %s486_s17, %s487_s18  }
   0x4   :  { %483 = dma.done.wait [#allocation5], 2048  }
   0x5   :  { %484 = vsyncadd [#allocation5], 4294965248  ;;  %v426_v0 = vld [vmem:[#allocation4 + $0x38] sm:$0xff]  ;;  %v425_v1 = vld [vmem:[#allocation4 + $0x30] sm:$0xff]  ;;  %vm34_vm0 = vcmask 7168   ;;  %v488_v9 = vmov -inf   ;;  %v265_v10 = vlaneseq }
   0x6   :  { %175 = vmatpush.bf16.xpose.msra.mxu0 %v426_v0  ;;  %v424_v2 = vld [vmem:[#allocation4 + $0x28] sm:$0xff]  ;;  %v423_v3 = vld [vmem:[#allocation4 + $0x20] sm:$0xff]  ;;  %v422_v4 = vld [vmem:[#allocation4 + $0x18] sm:$0xff]  ;;  %35 = vst.msk [vmem:[#allocation2] sm:$0xff] %vm34_vm0, %v488_v9  ;;  %v489_v18 = vmov 0   ;;  %v490_v19 = vmov 0.0  }
   0x7   :  { %v421_v5 = vld [vmem:[#allocation4 + $0x10] sm:$0xff]  ;;  %v420_v6 = vld [vmem:[#allocation4 + $0x8] sm:$0xff]  ;;  %v419_v7 = vld [vmem:[#allocation4] sm:$0xff]  ;;  %36 = vst.msk [vmem:[#allocation2 + $0x8] sm:$0xff] %vm34_vm0, %v488_v9  ;;  %v266_v11 = vand.u32 127, %v265_v10  ;;  %441 = vset.pattern.permute.xlu1 %v489_v18  ;;  %442 = vset.pattern.permute.xlu0 %v489_v18 }
   0x8   :  { %v418_v8 = vld [vmem:[%s539_s0] sm:$0xff]  ;;  %37 = vst.msk [vmem:[#allocation3] sm:$0xff] %vm34_vm0, %v490_v19  ;;  %v434_v20 = vld [vmem:[#allocation4 + $0x78] sm:$0xff]  ;;  %v433_v21 = vld [vmem:[#allocation4 + $0x70] sm:$0xff] }
   0x9   :  { %vm268_vm1 = vcmp.lt.s32.totalorder %v266_v11, 16  ;;  %38 = vst.msk [vmem:[#allocation3 + $0x8] sm:$0xff] %vm34_vm0, %v490_v19  ;;  %189 = vmatpush.bf16.xpose.msra.mxu1 %v434_v20  ;;  %v432_v24 = vld [vmem:[#allocation4 + $0x68] sm:$0xff]  ;;  %v431_v29 = vld [vmem:[#allocation4 + $0x60] sm:$0xff]  ;;  %v430_v32 = vld [vmem:[#allocation4 + $0x58] sm:$0xff] }
   0xa   :  { %v429_v33 = vld [vmem:[#allocation4 + $0x50] sm:$0xff]  ;;  %v428_v34 = vld [vmem:[#allocation4 + $0x48] sm:$0xff]  ;;  %v427_v35 = vld [vmem:[#allocation4 + $0x40] sm:$0xff] }
   0xd   :  { %v274_v22 = vld [vmem:[#allocation2] sm:$0xff] }
   0xe   :  { %176 = vmatpush.bf16.xpose.msra.mxu0 %v425_v1  ;;  %v275_v27 = vld [vmem:[#allocation2 + $0x8] sm:$0xff] }
   0xf   :  { %v290_v57 = vld [vmem:[#allocation3] sm:$0xff] }
  0x10   :  { %v291_v62 = vld [vmem:[#allocation3 + $0x8] sm:$0xff] }
  0x11   :  { %190 = vmatpush.bf16.xpose.msra.mxu1 %v433_v21 }
  0x16   :  { %177 = vmatpush.bf16.xpose.msra.mxu0 %v424_v2 }
  0x19   :  { %191 = vmatpush.bf16.xpose.msra.mxu1 %v432_v24 }
  0x1e   :  { %178 = vmatpush.bf16.xpose.msra.mxu0 %v423_v3 }
  0x21   :  { %192 = vmatpush.bf16.xpose.msra.mxu1 %v431_v29 }
  0x26   :  { %179 = vmatpush.bf16.xpose.msra.mxu0 %v422_v4 }
  0x29   :  { %193 = vmatpush.bf16.xpose.msra.mxu1 %v430_v32 }
  0x2e   :  { %180 = vmatpush.bf16.xpose.msra.mxu0 %v421_v5 }
  0x31   :  { %194 = vmatpush.bf16.xpose.msra.mxu1 %v429_v33 }
  0x36   :  { %181 = vmatpush.bf16.xpose.msra.mxu0 %v420_v6 }
  0x39   :  { %195 = vmatpush.bf16.xpose.msra.mxu1 %v428_v34 }
  0x3e   :  { %182 = vmatpush.bf16.xpose.msra.mxu0 %v419_v7  ;;  %v339_v7 = vld [vmem:[%s541_s2] sm:$0xff] }
  0x41   :  { %196 = vmatpush.bf16.xpose.msra.mxu1 %v427_v35 }
  0x45   :  { %183 = vmatmul.bf16.vlgmr.msra.gmra.mxu0 %v418_v8 }
  0x48   :  { %197 = vmatmul.bf16.vlgmr.msra.gmra.mxu1 %v418_v8 }
  0xc2   :  { %v184_v12 = vpop.f32.mrf.mxu0 }
  0xc3   :  { %v270_v13 = vsel %vm268_vm1, %v184_v12, -1e+30 }
  0xc4   :  { %v276_v14 = vmax.f32 %v270_v13, -1e+30 }
  0xc5   :  { %v198_v52 = vpop.f32.mrf.mxu1 }
  0xc6   :  { %277 = vmax.xlane.f32.xlu0 %v276_v14 }
  0xca   :  { %v186_v15 = vpop.f32.mrf.mxu0 }
  0xcb   :  { %v272_v16 = vsel %vm268_vm1, %v186_v15, -1e+30 }
  0xcc   :  { %v279_v17 = vmax.f32 %v272_v16, -1e+30 }
  0xcd   :  { %v200_v54 = vpop.f32.mrf.mxu1 }
  0xce   :  { %280 = vmax.xlane.f32.xlu0 %v279_v17 }
 0x139   :  { %v278_v23 = vpop.xlane.xlu0 %277 }
 0x13a   :  { %v282_v25 = vmax.f32 %v274_v22, %v278_v23 }
 0x13c   :  { %v284_v26 = vsub.f32 %v274_v22, %v282_v25  ;;  %327 = vst.msk [vmem:[#allocation2] sm:$0xff] %vm34_vm0, %v282_v25  ;;  %296 = vperm.xlu1 %441, %v282_v25  }
 0x13e   :  { %v286_v53 = vmul.f32 1.442695, %v284_v26 }
 0x141   :  { %v281_v28 = vpop.xlane.xlu0 %280 }
 0x142   :  { %v283_v30 = vmax.f32 %v275_v27, %v281_v28 }
 0x143   :  { %v329_v6 = vld [vmem:[#allocation2] sm:$0xff] }
 0x144   :  { %v285_v31 = vsub.f32 %v275_v27, %v283_v30  ;;  %328 = vst.msk [vmem:[#allocation2 + $0x8] sm:$0xff] %vm34_vm0, %v283_v30  ;;  %301 = vperm.xlu1 %441, %v283_v30  }
 0x146   :  { %v288_v55 = vmul.f32 1.442695, %v285_v31 }
 0x14b   :  { %v330_v12 = vld [vmem:[#allocation2 + $0x8] sm:$0xff] }
 0x1ae   :  { %v297_v36 = vpop.permute.xlu1 %296 }
 0x1af   :  { %v304_v37 = vsub.f32 %v270_v13, %v297_v36  ;;  %v305_v38 = vsub.f32 -1e+30, %v297_v36  ;;  %v340_v13 = vld [vmem:[%s541_s2 + $0x8] sm:$0xff] }
 0x1b1   :  { %v308_v39 = vmul.f32 1.442695, %v304_v37  ;;  %v310_v40 = vmul.f32 1.442695, %v305_v38 }
 0x1b3   :  { %443 = vpow2.f32 %v308_v39 }
 0x1b4   :  { %445 = vpow2.f32 %v310_v40 }
 0x1b6   :  { %v302_v41 = vpop.permute.xlu1 %301 }
 0x1b7   :  { %v306_v42 = vsub.f32 %v272_v16, %v302_v41  ;;  %v307_v43 = vsub.f32 -1e+30, %v302_v41 }
 0x1b9   :  { %v444_v44 = vpop.eup %443  ;;  %v312_v45 = vmul.f32 1.442695, %v306_v42  ;;  %v314_v46 = vmul.f32 1.442695, %v307_v43 }
 0x1ba   :  { %v446_v47 = vpop.eup %445 }
 0x1bb   :  { %447 = vpow2.f32 %v312_v45  ;;  %v316_v48 = vadd.f32 %v446_v47, %v444_v44 }
 0x1bc   :  { %449 = vpow2.f32 %v314_v46 }
 0x1bd   :  { %317 = vadd.xlane.f32.xlu2 %v316_v48  ;;  %451 = vpow2.f32 %v286_v53 }
 0x1be   :  { %453 = vpow2.f32 %v288_v55 }
 0x1c1   :  { %v448_v49 = vpop.eup %447 }
 0x1c2   :  { %v450_v50 = vpop.eup %449 }
 0x1c3   :  { %v319_v51 = vadd.f32 %v450_v50, %v448_v49  ;;  %v452_v56 = vpop.eup %451 }
 0x1c4   :  { %v292_v58 = vmul.f32 %v452_v56, %v290_v57  ;;  %v454_v61 = vpop.eup %453 }
 0x1c5   :  { %320 = vadd.xlane.f32.xlu2 %v319_v51  ;;  %v293_v63 = vmul.f32 %v454_v61, %v291_v62 }
 0x230   :  { %v318_v59 = vpop.xlane.xlu2 %317 }
 0x231   :  { %v322_v60 = vadd.f32 %v318_v59, %v292_v58 }
 0x233   :  { %325 = vst.msk [vmem:[#allocation3] sm:$0xff] %vm34_vm0, %v322_v60 }
 0x238   :  { %v321_v0 = vpop.xlane.xlu2 %320 }
 0x239   :  { %v323_v1 = vadd.f32 %v321_v0, %v293_v63 }
 0x23a   :  { %v331_v2 = vld [vmem:[#allocation3] sm:$0xff] }
 0x23b   :  { %455 = vlog2.f32 %v331_v2  ;;  %326 = vst.msk [vmem:[#allocation3 + $0x8] sm:$0xff] %vm34_vm0, %v323_v1 }
 0x241   :  { %v456_v3 = vpop.eup %455 }
 0x242   :  { %v334_v4 = vmul.f32 0.6931472, %v456_v3  ;;  %v332_v5 = vld [vmem:[#allocation3 + $0x8] sm:$0xff] }
 0x243   :  { %457 = vlog2.f32 %v332_v5 }
 0x244   :  { %v337_v8 = vadd.f32 %v334_v4, %v329_v6 }
 0x246   :  { %v341_v9 = vsub.f32 %v337_v8, %v339_v7 }
 0x248   :  { %343 = vst.msk [vmem:[%s542_s3] sm:$0xff] %vm34_vm0, %v341_v9 }
 0x249   :  { %v458_v10 = vpop.eup %457 }
 0x24a   :  { %v336_v11 = vmul.f32 0.6931472, %v458_v10 }
 0x24c   :  { %v338_v14 = vadd.f32 %v336_v11, %v330_v12 }
 0x24e   :  { %v342_v15 = vsub.f32 %v338_v14, %v340_v13 }
 0x250   :  { %344 = vst.msk [vmem:[%s542_s3 + $0x8] sm:$0xff] %vm34_vm0, %v342_v15 }
 0x251   :  { %349 = vsyncpa [#allocation5], 1 }

</bundles_post_ra>
